<compile_context>
chip_gen: v7x
topology: tpu7x:2x2x1
jax: 0.10.0
libtpu: 0.0.40
codegen_flags: <defaults>
</compile_context>

<pallas_src>
import jax
import jax.numpy as jnp
from jax.experimental import pallas as pl
from jax.experimental.pallas import tpu as pltpu

NUM_MAPS = 3  # number of parallel map modules

_SUBLANE = {4: 8, 2: 16, 1: 32}  # min second-to-last tile per itemsize


def _round_up(x, m):
    return ((x + m - 1) // m) * m


# ---------------------------------------------------------------------------
# Kernels
# ---------------------------------------------------------------------------
def pmr_kernel(x_ref, w_ref, b_ref, o_ref):
    """Single-shot tile: o = x @ w + b.  Shapes: (tm,Hin) @ (Hin,tn) -> (tm,tn)."""
    acc = jnp.dot(x_ref[...], w_ref[...], preferred_element_type=jnp.float32)
    o_ref[...] = (acc + b_ref[...].astype(jnp.float32)).astype(o_ref.dtype)


def pmr_kernel_kacc(x_ref, w_ref, b_ref, o_ref, acc_ref):
    """Hin-tiled tile with f32 VMEM accumulator; grid axis 2 is the reduction."""
    k = pl.program_id(2)

    @pl.when(k == 0)
    def _():
        acc_ref[...] = jnp.zeros_like(acc_ref)

    acc_ref[...] += jnp.dot(x_ref[...], w_ref[...],
                            preferred_element_type=jnp.float32)

    @pl.when(k == pl.num_programs(2) - 1)
    def _():
        o_ref[...] = (acc_ref[...] + b_ref[...].astype(jnp.float32)).astype(o_ref.dtype)


# ---------------------------------------------------------------------------
# Wrapper
# ---------------------------------------------------------------------------
def parallel_map_reduce(x, weights, biases):
    """x: (B, S, Hin); weights: (K, Hin, Hout); biases: (K, Hout).

    Implements: reduce_sum([x @ W_k + b_k for k in range(K)]).
    """
    B, S, Hin = x.shape
    K, _, Hout = weights.shape
    assert K == NUM_MAPS, "algebraic fold assumes the configured number of maps"

    dtype = x.dtype
    itemsize = jnp.dtype(dtype).itemsize
    sub = _SUBLANE[itemsize]

    # Fold (valid only for a SUM reduce).  Accumulate the fold in f32, then
    # cast back to the operand dtype so the MXU runs at native-dtype rate.
    w_sum = jnp.sum(weights.astype(jnp.float32), axis=0).astype(dtype)            # (Hin, Hout)
    b_sum = jnp.sum(biases.astype(jnp.float32), axis=0).astype(dtype).reshape(1, Hout)

    M = B * S
    x2 = x.reshape(M, Hin)
    Hout_p = _round_up(Hout, 128)  # lane-dense output / weight columns

    # --- Per-generation VMEM budget (v5e/v6e: 128 MiB, v7x: 64 MiB physical). ---
    try:
        phys_vmem = int(pltpu.get_tpu_info().vmem_capacity_bytes)
    except Exception:
        phys_vmem = 64 << 20
    vmem_limit = min((phys_vmem * 3) // 4, 112 << 20)   # ~96 MiB / ~48 MiB
    budget = int(vmem_limit * 0.85)                     # headroom for compiler scratch

    # --- Row tile: dtype-sublane aligned; bigger tiles where VMEM allows. ---
    tm_max = 512 if vmem_limit >= (96 << 20) else 256
    tm = min(_round_up(M, sub), tm_max)

    # VMEM footprint models (double-buffered inputs/outputs).
    def bytes_resident(tm_):
        return 2 * itemsize * (tm_ * Hin + Hin * Hout_p + Hout_p + tm_ * Hout_p)

    def bytes_streamed(tm_, tn_):
        return 2 * itemsize * (tm_ * Hin + Hin * tn_ + tn_ + tm_ * tn_)

    def bytes_kacc(tm_, tn_, tk_):
        return 2 * itemsize * (tm_ * tk_ + tk_ * tn_ + tn_ + tm_ * tn_) + 4 * tm_ * tn_

    # --- Path / tile selection ------------------------------------------------
    path, tn, tk = None, None, None
    if bytes_resident(tm) <= budget:
        path = "resident"
    elif tm > 256 and bytes_resident(256) <= budget:
        path, tm = "resident", 256
    else:
        for tm_try in ([tm] if tm <= 256 else [tm, 256]):
            for tn_try in (512, 256, 128):
                if Hout_p % tn_try == 0 and bytes_streamed(tm_try, tn_try) <= budget:
                    path, tm, tn = "streamed", tm_try, tn_try
                    break
            if path is not None:
                break
        if path is None:
            # Hin too large for a full-depth panel: tile the reduction axis.
            path = "kacc"
            tm = min(tm, 256)
            tn = 256 if Hout_p % 256 == 0 else 128
            tk = next((t for t in (2048, 1024, 512, 256)
                       if bytes_kacc(tm, tn, t) <= budget), 256)

    M_p = _round_up(M, tm)

    # --- Padding (weight/bias column pad is cheap; x rows only when ragged). ---
    # TODO(synk): handle a ragged final row tile in-kernel (masked store) to
    # avoid the wrapper-side pad/slice HBM copies when M % tm != 0.
    w_p = jnp.pad(w_sum, ((0, 0), (0, Hout_p - Hout))) if Hout_p != Hout else w_sum
    b_p = jnp.pad(b_sum, ((0, 0), (0, Hout_p - Hout))) if Hout_p != Hout else b_sum
    x_p = jnp.pad(x2, ((0, M_p - M), (0, 0))) if M_p != M else x2

    out_bytes = M_p * Hout_p * itemsize
    bytes_x = M_p * Hin * itemsize
    bytes_w = Hin * Hout_p * itemsize
    flops = 2 * M_p * Hin * Hout_p

    if path == "resident":
        # W and b fetched ONCE (constant index_map); widest lane-dense output block.
        num_i = M_p // tm
        grid = (num_i,)
        in_specs = [
            pl.BlockSpec((tm, Hin), lambda i: (i, 0)),        # x row tile (streamed)
            pl.BlockSpec((Hin, Hout_p), lambda i: (0, 0)),    # folded W (resident)
            pl.BlockSpec((1, Hout_p), lambda i: (0, 0)),      # folded b (resident)
        ]
        out_specs = pl.BlockSpec((tm, Hout_p), lambda i: (i, 0))
        semantics = ("parallel",)
        kernel, scratch = pmr_kernel, []
        bytes_accessed = bytes_x + bytes_w + Hout_p * itemsize + out_bytes

    elif path == "streamed":
        num_i, num_j = M_p // tm, Hout_p // tn
        # Choose grid order so the larger operand is fetched once.
        if bytes_w * (num_i - 1) <= bytes_x * (num_j - 1):
            # rows outer: x fetched once, W re-streamed num_i times.
            grid = (num_i, num_j)
            in_specs = [
                pl.BlockSpec((tm, Hin), lambda i, j: (i, 0)),
                pl.BlockSpec((Hin, tn), lambda i, j: (0, j)),
                pl.BlockSpec((1, tn), lambda i, j: (0, j)),
            ]
            out_specs = pl.BlockSpec((tm, tn), lambda i, j: (i, j))
            bytes_accessed = bytes_x + bytes_w * num_i + Hout_p * itemsize * num_i + out_bytes
        else:
            # cols outer: W fetched once, x re-streamed num_j times.
            grid = (num_j, num_i)
            in_specs = [
                pl.BlockSpec((tm, Hin), lambda j, i: (i, 0)),
                pl.BlockSpec((Hin, tn), lambda j, i: (0, j)),
                pl.BlockSpec((1, tn), lambda j, i: (0, j)),
            ]
            out_specs = pl.BlockSpec((tm, tn), lambda j, i: (i, j))
            bytes_accessed = bytes_x * num_j + bytes_w + Hout_p * itemsize + out_bytes
        semantics = ("parallel", "parallel")
        kernel, scratch = pmr_kernel, []

    else:  # "kacc": Hin reduction axis with f32 accumulator
        Hin_p = _round_up(Hin, tk)
        if Hin_p != Hin:
            x_p = jnp.pad(x_p, ((0, 0), (0, Hin_p - Hin)))
            w_p = jnp.pad(w_p, ((0, Hin_p - Hin), (0, 0)))
        num_i, num_j, num_k = M_p // tm, Hout_p // tn, Hin_p // tk
        grid = (num_i, num_j, num_k)
        in_specs = [
            pl.BlockSpec((tm, tk), lambda i, j, k: (i, k)),
            pl.BlockSpec((tk, tn), lambda i, j, k: (k, j)),
            pl.BlockSpec((1, tn), lambda i, j, k: (0, j)),
        ]
        out_specs = pl.BlockSpec((tm, tn), lambda i, j, k: (i, j))
        semantics = ("parallel", "parallel", "arbitrary")
        kernel = pmr_kernel_kacc
        scratch = [pltpu.VMEM((tm, tn), jnp.float32)]
        flops = 2 * M_p * Hin_p * Hout_p
        bytes_accessed = (M_p * Hin_p * itemsize * num_j
                          + Hin_p * Hout_p * itemsize * num_i
                          + Hout_p * itemsize * num_i + out_bytes)

    out = pl.pallas_call(
        kernel,
        out_shape=jax.ShapeDtypeStruct((M_p, Hout_p), dtype),
        grid=grid,
        in_specs=in_specs,
        out_specs=out_specs,
        scratch_shapes=scratch,
        compiler_params=pltpu.CompilerParams(
            dimension_semantics=semantics,
            vmem_limit_bytes=int(vmem_limit),
        ),
        cost_estimate=pl.CostEstimate(
            flops=int(flops),
            transcendentals=0,
            bytes_accessed=int(bytes_accessed),
        ),
    )(x_p, w_p, b_p)

    if M_p != M or Hout_p != Hout:
        out = out[:M, :Hout]
    return out.reshape(B, S, Hout)


def reference(x, weights, biases):
    # Pure-JAX reference replicating: reduce_module([m(x) for m in map_modules])
    outs = [x @ weights[k] + biases[k] for k in range(NUM_MAPS)]
    return sum(outs)


if __name__ == "__main__":
    B, S, Hin, Hout = 2, 8, 32, 32

    key = jax.random.PRNGKey(0)
    kx, *kws = jax.random.split(key, 1 + 2 * NUM_MAPS)

    x = jax.random.normal(kx, (B, S, Hin), dtype=jnp.float32)

    # Deterministic per-map Linear parameters (PyTorch Linear: y = x W^T + b),
    # stored already transposed as (Hin, Hout) for the kernel.
    ws, bs = [], []
    for k in range(NUM_MAPS):
        w = jax.random.normal(kws[2 * k], (Hin, Hout), dtype=jnp.float32) * 0.05
        b = jax.random.normal(kws[2 * k + 1], (Hout,), dtype=jnp.float32) * 0.05
        ws.append(w)
        bs.append(b)
    weights = jnp.stack(ws, axis=0)   # (K, Hin, Hout)
    biases = jnp.stack(bs, axis=0)    # (K, Hout)

    y = parallel_map_reduce(x, weights, biases)
    y = jax.block_until_ready(y)

    y_ref = reference(x, weights, biases)
    assert y.shape == (B, S, Hout)
    assert jnp.allclose(y, y_ref, atol=1e-4, rtol=1e-4), "mismatch vs reference"

    print("KERNEL_OK")
</pallas_src>

<mosaic_0001>
module attributes {stable_mosaic.version = 11 : i64} {
  func.func @pmr_kernel(%arg0: i32, %arg1: memref<16x32xf32, #tpu.memory_space<vmem>>, %arg2: memref<32x128xf32, #tpu.memory_space<vmem>>, %arg3: memref<1x128xf32, #tpu.memory_space<vmem>>, %arg4: memref<16x128xf32, #tpu.memory_space<vmem>>) attributes {dimension_semantics = [#tpu.dimension_semantics<parallel>], iteration_bounds = array<i64: 1>, scalar_prefetch = 0 : i64, scratch_operands = 0 : i64, tpu.core_type = #tpu.core_type<tc>, window_params = [{transform_indices = @transform_0, window_bounds = array<i64: 16, 32>}, {pipeline_mode = #tpu.pipeline_mode<synchronous>, transform_indices = @transform_1, window_bounds = array<i64: 32, 128>}, {pipeline_mode = #tpu.pipeline_mode<synchronous>, transform_indices = @transform_2, window_bounds = array<i64: 1, 128>}, {transform_indices = @transform_3, window_bounds = array<i64: 16, 128>}]} {
    %c0 = arith.constant 0 : index
    %c0_0 = arith.constant 0 : index
    %0 = vector.load %arg1[%c0, %c0_0] : memref<16x32xf32, #tpu.memory_space<vmem>>, vector<16x32xf32>
    %c0_1 = arith.constant 0 : index
    %c0_2 = arith.constant 0 : index
    %1 = vector.load %arg2[%c0_1, %c0_2] : memref<32x128xf32, #tpu.memory_space<vmem>>, vector<32x128xf32>
    %cst = arith.constant dense<0.000000e+00> : vector<16x128xf32>
    %2 = tpu.matmul %0, %1, %cst {dimension_numbers = #tpu.dot_dimension_numbers<[1], [0], [0], [1], [0, 0, 1, 1], [], []>} : vector<16x32xf32>, vector<32x128xf32>, vector<16x128xf32> -> vector<16x128xf32>
    %c0_3 = arith.constant 0 : index
    %c0_4 = arith.constant 0 : index
    %3 = vector.load %arg3[%c0_3, %c0_4] : memref<1x128xf32, #tpu.memory_space<vmem>>, vector<1x128xf32>
    %4 = vector.broadcast %3 : vector<1x128xf32> to vector<16x128xf32>
    %5 = arith.addf %2, %4 : vector<16x128xf32>
    %c0_5 = arith.constant 0 : index
    %c0_6 = arith.constant 0 : index
    %6 = vector.load %arg4[%c0_5, %c0_6] : memref<16x128xf32, #tpu.memory_space<vmem>>, vector<16x128xf32>
    tpu.vector_store %arg4[%c0_5, %c0_6], %5 {strides = array<i32>} : memref<16x128xf32, #tpu.memory_space<vmem>>, vector<16x128xf32>,
    return
  }
  func.func @transform_0(%arg0: i32) -> (i32, i32) {
    %c0_i32 = arith.constant 0 : i32
    %c0_i32_0 = arith.constant 0 : i32
    return %arg0, %c0_i32 : i32, i32
  }
  func.func @transform_1(%arg0: i32) -> (i32, i32) {
    %c0_i32 = arith.constant 0 : i32
    %c0_i32_0 = arith.constant 0 : i32
    %c0_i32_1 = arith.constant 0 : i32
    return %c0_i32, %c0_i32_0 : i32, i32
  }
  func.func @transform_2(%arg0: i32) -> (i32, i32) {
    %c0_i32 = arith.constant 0 : i32
    %c0_i32_0 = arith.constant 0 : i32
    %c0_i32_1 = arith.constant 0 : i32
    return %c0_i32, %c0_i32_0 : i32, i32
  }
  func.func @transform_3(%arg0: i32) -> (i32, i32) {
    %c0_i32 = arith.constant 0 : i32
    %c0_i32_0 = arith.constant 0 : i32
    return %arg0, %c0_i32 : i32, i32
  }
}

</mosaic_0001>

<bundles_post_ra>
// kernel: tpu_custom_call.1
= control target key start
LH: loop header
LB: loop body
LE: loop exit
PB: predicated region body
PF: predicated region fallthrough
CT: control target
= control target key end

     0   :  { %8 = vsyncpa [#allocation3], 0  ;;  %s336_s0 = inlined_call_operand.hbm [shape: f32[16,32], index: 0, kind: input, shape index: {}]   ;;  %s337_s1 = inlined_call_operand.hbm [shape: f32[32,128], index: 1, kind: input, shape index: {}]   ;;  %s338_s2 = inlined_call_operand.vmem [shape: f32[1,128], index: 2, kind: input, shape index: {}]   ;;  %s339_s3 = inlined_call_operand.hbm [shape: f32[16,128], index: 3, kind: output, shape index: {}]  }
   0x1   :  { %9 = vsyncpa [#allocation6], 0 }
   0x2   :  { %10 = vsyncpa [#allocation4], 0  ;;  %s263_s12 = smov [#allocation2]   ;;  %s191_s16 = scalar_lea.hbm %s336_s0, 256 }
   0x3   :  { %s16_s13 = sshll.u32 %s263_s12, 4  ;;  %p192_p0 = scmp.ne.s32.totalorder %s336_s0, %s191_s16  ;;  %s17_s13 = int_to_ptr.vmem [resolvable:$true] %s16_s13 }
   0x4   :  { %p195_p1 = scmp.lt.u32.totalorder %s191_s16, %s336_s0 }
   0x6   :  { %p197_p2 = pnand %p195_p1, %p192_p0 }
   0x8   :  { %200 = shalt.err (!%p197_p2)
}
   0x9   :  { %s201_s21 = scalar_lea.vmem %s17_s13, 256  ;;  %p206_p4 = scmp.lt.s32.totalorder %s17_s13, %s17_s13 }
   0xa   :  { %p202_p3 = scmp.ne.s32.totalorder %s17_s13, %s201_s21  ;;  %p207_p5 = scmp.lt.s32.totalorder %s201_s21, %s201_s21 }
   0xc   :  { %p208_p6 = por %p207_p5, %p206_p4 }
   0xe   :  { %p209_p7 = pnand %p208_p6, %p202_p3 }
  0x10   :  { %212 = shalt.err (!%p209_p7)
}
  0x11   :  { %s264_s22 = smov 128   ;;  %s265_s23 = smov 8  }
  0x12   :  { %22 = dma.hbm_to_vmem [thread:$0]  %s336_s0, 256, %s17_s13, [#allocation3], %s264_s22, %s264_s22, %s265_s23  }
  0x13   :  { %s266_s26 = smov [#allocation5]   ;;  %s213_s30 = scalar_lea.hbm %s337_s1, 512 }
  0x14   :  { %s28_s27 = sshll.u32 %s266_s26, 4  ;;  %p214_p8 = scmp.ne.s32.totalorder %s337_s1, %s213_s30  ;;  %s29_s27 = int_to_ptr.vmem [resolvable:$true] %s28_s27 }
  0x15   :  { %p217_p9 = scmp.lt.u32.totalorder %s213_s30, %s337_s1 }
  0x17   :  { %p219_p10 = pnand %p217_p9, %p214_p8 }
  0x19   :  { %222 = shalt.err (!%p219_p10)
}
  0x1a   :  { %s223_s8 = scalar_lea.vmem %s29_s27, 512  ;;  %p228_p12 = scmp.lt.s32.totalorder %s29_s27, %s29_s27 }
  0x1b   :  { %p224_p11 = scmp.ne.s32.totalorder %s29_s27, %s223_s8  ;;  %p229_p13 = scmp.lt.s32.totalorder %s223_s8, %s223_s8 }
  0x1d   :  { %p230_p0 = por %p229_p13, %p228_p12 }
  0x1f   :  { %p231_p1 = pnand %p230_p0, %p224_p11 }
  0x21   :  { %234 = shalt.err (!%p231_p1)
}
  0x22   :  { %34 = dma.hbm_to_vmem [thread:$0]  %s337_s1, 512, %s29_s27, [#allocation6], %s264_s22, %s264_s22, %s265_s23  }
  0x23   :  { %257 = dma.done.wait [#allocation3], 256  }
  0x24   :  { %258 = vsyncadd [#allocation3], 4294967040 }
  0x25   :  { %259 = dma.done.wait [#allocation6], 512  }
  0x26   :  { %260 = vsyncadd [#allocation6], 4294966784  ;;  %vm56_vm0 = vcmask 261120   ;;  %v45_v0 = vld [vmem:[#allocation5] sm:$0xff]  ;;  %v46_v1 = vld [vmem:[#allocation5 + $0x8] sm:$0xff]  ;;  %s267_s11 = smov [#allocation7]  }
  0x27   :  { %v47_v2 = vld [vmem:[#allocation5 + $0x10] sm:$0xff]  ;;  %v178_v3 = vpack.c.bf16 %v46_v1, %v45_v0  ;;  %v48_v4 = vld [vmem:[#allocation5 + $0x18] sm:$0xff]  ;;  %s145_s12 = sshll.u32 %s267_s11, 4  ;;  %s146_s12 = int_to_ptr.vmem [resolvable:$true] %s145_s12 }
  0x28   :  { %v43_v5 = vld [vmem:[#allocation2] sm:$0xff]  ;;  %v182_v6 = vpack.c.bf16 %v48_v4, %v47_v2  ;;  %v44_v7 = vld [vmem:[#allocation2 + $0x8] sm:$0xff]  ;;  %s235_s13 = scalar_lea.vmem %s146_s12, 256  ;;  %p240_p3 = scmp.lt.s32.totalorder %s146_s12, %s146_s12 }
  0x29   :  { %175 = vmatprep.mubr.msk.f32.mxu0 %vm56_vm0, %v43_v5  ;;  %179 = vmatprep.subr.bf16.mxu0 %v178_v3  ;;  %v158_v8 = vld [vmem:[%s338_s2] ss:$0 sm:$0xff]  ;;  %p236_p2 = scmp.ne.s32.totalorder %s146_s12, %s235_s13  ;;  %p241_p4 = scmp.lt.s32.totalorder %s235_s13, %s235_s13 }
  0x2a   :  { %181 = vmatpush3.bf16.msra.mxu0 %v178_v3 }
  0x2b   :  { %183 = vmatprep.subr.bf16.mxu0 %v182_v6  ;;  %p242_p5 = por %p241_p4, %p240_p3 }
  0x2d   :  { %p243_p6 = pnand %p242_p5, %p236_p2 }
  0x2e   :  { %185 = vmatpush3.bf16.msra.mxu0 %v182_v6 }
  0x31   :  { %176 = vmatmul.mubr.msk.f32.vlgmr.msra.gmra.mrb[0].mxu0 %vm56_vm0, %v44_v7 }
 0x104   :  { %v177_v9 = vpop.f32.mrb[0].mxu0 }
 0x105   :  { %v135_v10 = vadd.f32 %v177_v9, %v158_v8  ;;  %v129_v11 = vpop.f32.mrb[1].mxu0 }
 0x106   :  { %v130_v12 = vadd.f32 %v158_v8, %v129_v11 }
 0x107   :  { %139 = vst [vmem:[#allocation7 + $0x8] sm:$0xff] %v135_v10 }
 0x108   :  { %138 = vst [vmem:[#allocation7] sm:$0xff] %v130_v12 }
 0x109   :  { %246 = shalt.err (!%p243_p6)
}
 0x10a   :  { %s247_s2 = scalar_lea.hbm %s339_s3, 256 }
 0x10b   :  { %p248_p7 = scmp.ne.s32.totalorder %s339_s3, %s247_s2  ;;  %p251_p8 = scmp.lt.u32.totalorder %s247_s2, %s339_s3 }
 0x10d   :  { %p253_p9 = pnand %p251_p8, %p248_p7 }
 0x10f   :  { %256 = shalt.err (!%p253_p9)
}
 0x110   :  { %151 = dma.vmem_to_hbm [thread:$0]  %s146_s12, 256, %s339_s3, [#allocation4], %s264_s22, %s264_s22, %s265_s23  }
 0x111   :  { %261 = dma.done.wait [#allocation4], 256  }
 0x112   :  { %262 = vsyncadd [#allocation4], 4294967040 }
 0x113   :  { %155 = vsyncpa [#allocation3], 1 }
 0x114   :  { %156 = vsyncpa [#allocation6], 1 }
 0x115   :  { %157 = vsyncpa [#allocation4], 1 }

</bundles_post_ra>
